<compile_context>
chip_gen: v7x
topology: tpu7x:2x2x1
jax: 0.10.0
libtpu: 0.0.40
codegen_flags: <defaults>
</compile_context>

<pallas_src>
import jax
import jax.numpy as jnp
from jax.experimental import pallas as pl
from jax.experimental.pallas import tpu as pltpu


def lstm_decoder_kernel(z_ref, w_ref, wout_ref, bias_ref, out_ref):
    """Full LSTM recurrence + output projection in one invocation.

    z_ref    : (B, L)       f32  latent (same vector fed at every time step)
    w_ref    : (2, L, 4L)   bf16 [0] = W_ih^T, [1] = W_hh^T (PyTorch gate order i,f,g,o)
    wout_ref : (L, O)       bf16 output-layer weight, transposed
    bias_ref : (2, W)       f32  row0[:4L] = b_ih + b_hh, row1[:S*O] = b_out tiled S times
    out_ref  : (B, S*O)     f32  lane-dense output (reshaped to (B,S,O) outside)
    """
    B, L = z_ref.shape
    O = wout_ref.shape[1]
    SO = out_ref.shape[1]
    S = SO // O

    wih = w_ref[0]                      # (L, 4L) bf16
    whh = w_ref[1]                      # (L, 4L) bf16
    b_gate = bias_ref[0:1, :4 * L]      # (1, 4L) f32
    b_out = bias_ref[1:2, :SO]          # (1, S*O) f32

    # Same z at every step -> input projection computed once (bf16 MXU, f32 acc).
    z_bf = z_ref[...].astype(jnp.bfloat16)
    x_proj = jnp.dot(z_bf, wih, preferred_element_type=jnp.float32) + b_gate

    # Static lane mask selecting the g (cell-candidate) gate block: tanh there,
    # sigmoid everywhere else -> 2 full-vreg EUP pushes instead of 4 sliced ones.
    lane = jax.lax.broadcasted_iota(jnp.int32, (B, 4 * L), 1)
    g_mask = jnp.logical_and(lane >= 2 * L, lane < 3 * L)

    # TODO(synk): keep W_hh resident in the MXU across the unrolled recurrence via
    # pltpu.matmul_push_rhs / matmul_acc_lhs / matmul_pop; using jnp.dot per step for
    # lowering robustness (same RHS is re-streamed, which is cheap at these sizes).
    c = None
    h_bf = None
    hs = []
    for t in range(S):  # fully unrolled at trace time (S static, tiny live state)
        if t == 0:
            gates = x_proj                                   # h0 = 0 -> no W_hh matmul
        else:
            gates = x_proj + jnp.dot(h_bf, whh, preferred_element_type=jnp.float32)
        sig = jax.nn.sigmoid(gates)                          # full-vreg EUP
        tnh = jnp.tanh(gates)                                # full-vreg EUP
        act = jnp.where(g_mask, tnh, sig)                    # [i | f | g | o] activated
        i_g = act[:, 0 * L:1 * L]
        f_g = act[:, 1 * L:2 * L]
        g_g = act[:, 2 * L:3 * L]
        o_g = act[:, 3 * L:4 * L]
        ig = i_g * g_g
        c = ig if t == 0 else f_g * c + ig                   # f32 state
        h = o_g * jnp.tanh(c)                                # f32 state
        h_bf = h.astype(jnp.bfloat16)                        # single bf16 cast per step
        hs.append(h_bf)

    # Output projection with the tiny (L,O) weight (no 87.5%-zero block-diag):
    # S small MXU dots off the serial chain, one lane-dense (B, S*O) store.
    wout = wout_ref[...]
    ys = [jnp.dot(hb, wout, preferred_element_type=jnp.float32) for hb in hs]
    y = jnp.concatenate(ys, axis=1) + b_out                  # (B, S*O)
    out_ref[...] = y.astype(out_ref.dtype)


def prepare_params(params, sequence_length):
    """One-time layout prep: transposes, bias sum, operand packing, bf16 casts."""
    L = params["w_ih"].shape[1]
    O = params["w_out"].shape[0]
    S = sequence_length
    # Stack the two recurrent weights into a single bf16 operand (one DMA).
    w_stack = jnp.stack([params["w_ih"].T, params["w_hh"].T], axis=0).astype(jnp.bfloat16)
    wout_t = params["w_out"].T.astype(jnp.bfloat16)          # (L, O)
    # Pack both tiny bias rows into one f32 operand (one DMA).
    width = max(4 * L, S * O)
    b_gate = jnp.zeros((width,), jnp.float32).at[:4 * L].set(
        (params["b_ih"] + params["b_hh"]).astype(jnp.float32))
    b_out = jnp.zeros((width,), jnp.float32).at[:S * O].set(
        jnp.tile(params["b_out"].astype(jnp.float32), S))
    bias = jnp.stack([b_gate, b_out], axis=0)                # (2, width)
    return {"w": w_stack, "wout": wout_t, "bias": bias, "L": L, "O": O, "S": S}


def lstm_decoder(z, prep):
    """Wrapper: single pallas_call, output reshaped (B, S*O) -> (B, S, O) (free)."""
    B, L = z.shape
    S, O = prep["S"], prep["O"]
    # Everything fits in ~20 KiB -> whole-array VMEM residency, no grid, no megacore
    # split at B=2 (the recurrence is serial; splitting would only duplicate weight
    # DMA + launch overhead). Batch more latents per call for throughput instead.
    vmem = pl.BlockSpec(memory_space=pltpu.MemorySpace.VMEM)
    out_flat = pl.pallas_call(
        lstm_decoder_kernel,
        out_shape=jax.ShapeDtypeStruct((B, S * O), jnp.float32),
        in_specs=[vmem] * 4,
        out_specs=vmem,
    )(z, prep["w"], prep["wout"], prep["bias"])
    return out_flat.reshape(B, S, O)


def lstm_decoder_ref(z, params, sequence_length):
    """Pure-JAX f32 reference of the PyTorch forward (for correctness check)."""
    w_ih, w_hh, b_ih, b_hh, w_out, b_out = (
        params["w_ih"], params["w_hh"], params["b_ih"],
        params["b_hh"], params["w_out"], params["b_out"],
    )
    L = z.shape[1]
    h = jnp.zeros_like(z)
    c = jnp.zeros_like(z)
    outs = []
    for _ in range(sequence_length):
        gates = z @ w_ih.T + b_ih + h @ w_hh.T + b_hh
        i_g = jax.nn.sigmoid(gates[:, 0 * L:1 * L])
        f_g = jax.nn.sigmoid(gates[:, 1 * L:2 * L])
        g_g = jnp.tanh(gates[:, 2 * L:3 * L])
        o_g = jax.nn.sigmoid(gates[:, 3 * L:4 * L])
        c = f_g * c + i_g * g_g
        h = o_g * jnp.tanh(c)
        outs.append(h @ w_out.T + b_out)
    return jnp.stack(outs, axis=1)


def init_params(key, latent_dim, output_dim):
    """Deterministic init matching PyTorch parameter shapes (uniform +/- 1/sqrt(H))."""
    ks = jax.random.split(key, 6)
    bound = 1.0 / jnp.sqrt(latent_dim)
    u = lambda k, shp: jax.random.uniform(k, shp, jnp.float32, -bound, bound)
    return {
        "w_ih": u(ks[0], (4 * latent_dim, latent_dim)),
        "w_hh": u(ks[1], (4 * latent_dim, latent_dim)),
        "b_ih": u(ks[2], (4 * latent_dim,)),
        "b_hh": u(ks[3], (4 * latent_dim,)),
        "w_out": u(ks[4], (output_dim, latent_dim)),
        "b_out": u(ks[5], (output_dim,)),
    }


if __name__ == "__main__":
    latent_dim = 32
    output_dim = 16
    sequence_length = 8
    batch = 2

    key = jax.random.PRNGKey(0)
    kz, kp = jax.random.split(key)
    z = jax.random.normal(kz, (batch, latent_dim), jnp.float32)
    params = init_params(kp, latent_dim, output_dim)

    prep = prepare_params(params, sequence_length)      # one-time weight/layout prep
    out = lstm_decoder(z, prep)
    out = jax.block_until_ready(out)

    ref = lstm_decoder_ref(z, params, sequence_length)
    assert out.shape == (batch, sequence_length, output_dim)
    # bf16 MXU operands (f32 accumulation/state) -> loosened tolerance vs f32 reference.
    assert jnp.allclose(out, ref, atol=5e-2, rtol=5e-2), float(jnp.max(jnp.abs(out - ref)))

    print("KERNEL_OK")
</pallas_src>

<mosaic_0001>
module attributes {stable_mosaic.version = 11 : i64} {
  func.func @lstm_decoder_kernel(%arg0: memref<2x32xf32, #tpu.memory_space<vmem>>, %arg1: memref<2x32x128xbf16, #tpu.memory_space<vmem>>, %arg2: memref<32x16xbf16, #tpu.memory_space<vmem>>, %arg3: memref<2x128xf32, #tpu.memory_space<vmem>>, %arg4: memref<2x128xf32, #tpu.memory_space<vmem>>) attributes {dimension_semantics = [], scalar_prefetch = 0 : i64, scratch_operands = 0 : i64, tpu.core_type = #tpu.core_type<tc>} {
    %c0 = arith.constant 0 : index
    %c0_0 = arith.constant 0 : index
    %c0_1 = arith.constant 0 : index
    %0 = vector.load %arg1[%c0, %c0_0, %c0_1] : memref<2x32x128xbf16, #tpu.memory_space<vmem>>, vector<1x32x128xbf16>
    %1 = vector.shape_cast %0 : vector<1x32x128xbf16> to vector<32x128xbf16>
    %c1 = arith.constant 1 : index
    %c0_2 = arith.constant 0 : index
    %c0_3 = arith.constant 0 : index
    %2 = vector.load %arg1[%c1, %c0_2, %c0_3] : memref<2x32x128xbf16, #tpu.memory_space<vmem>>, vector<1x32x128xbf16>
    %3 = vector.shape_cast %2 : vector<1x32x128xbf16> to vector<32x128xbf16>
    %c0_4 = arith.constant 0 : index
    %c0_5 = arith.constant 0 : index
    %4 = vector.load %arg3[%c0_4, %c0_5] : memref<2x128xf32, #tpu.memory_space<vmem>>, vector<1x128xf32>
    %c1_6 = arith.constant 1 : index
    %c0_7 = arith.constant 0 : index
    %5 = vector.load %arg3[%c1_6, %c0_7] : memref<2x128xf32, #tpu.memory_space<vmem>>, vector<1x128xf32>
    %c0_8 = arith.constant 0 : index
    %c0_9 = arith.constant 0 : index
    %6 = vector.load %arg0[%c0_8, %c0_9] : memref<2x32xf32, #tpu.memory_space<vmem>>, vector<2x32xf32>
    %7 = arith.truncf %6 : vector<2x32xf32> to vector<2x32xbf16>
    %cst = arith.constant dense<0.000000e+00> : vector<2x128xf32>
    %8 = tpu.matmul %7, %1, %cst {dimension_numbers = #tpu.dot_dimension_numbers<[1], [0], [0], [1], [0, 0, 1, 1], [], []>} : vector<2x32xbf16>, vector<32x128xbf16>, vector<2x128xf32> -> vector<2x128xf32>
    %9 = vector.broadcast %4 : vector<1x128xf32> to vector<2x128xf32>
    %10 = arith.addf %8, %9 : vector<2x128xf32>
    %11 = tpu.iota {dimensions = array<i32: 1>} : vector<2x128xi32>
    %c64_i32 = arith.constant 64 : i32
    %12 = vector.broadcast %c64_i32 : i32 to vector<2x128xi32>
    %13 = arith.cmpi sge, %11, %12 : vector<2x128xi32>
    %c96_i32 = arith.constant 96 : i32
    %14 = vector.broadcast %c96_i32 : i32 to vector<2x128xi32>
    %15 = arith.cmpi slt, %11, %14 : vector<2x128xi32>
    %16 = arith.andi %13, %15 : vector<2x128xi1>
    %17 = arith.negf %10 : vector<2x128xf32>
    %18 = math.exp %17 : vector<2x128xf32>
    %cst_10 = arith.constant 1.000000e+00 : f32
    %19 = vector.broadcast %cst_10 : f32 to vector<2x128xf32>
    %20 = arith.addf %19, %18 : vector<2x128xf32>
    %21 = arith.divf %19, %20 : vector<2x128xf32>
    %22 = math.tanh %10 : vector<2x128xf32>
    %23 = arith.select %16, %22, %21 : vector<2x128xi1>, vector<2x128xf32>
    %24 = vector.extract_strided_slice %23 {offsets = [0, 0], sizes = [2, 32], strides = [1, 1]} : vector<2x128xf32> to vector<2x32xf32>
    %25 = vector.extract_strided_slice %23 {offsets = [0, 64], sizes = [2, 32], strides = [1, 1]} : vector<2x128xf32> to vector<2x32xf32>
    %26 = vector.extract_strided_slice %23 {offsets = [0, 96], sizes = [2, 32], strides = [1, 1]} : vector<2x128xf32> to vector<2x32xf32>
    %27 = arith.mulf %24, %25 : vector<2x32xf32>
    %28 = math.tanh %27 : vector<2x32xf32>
    %29 = arith.mulf %26, %28 : vector<2x32xf32>
    %30 = arith.truncf %29 : vector<2x32xf32> to vector<2x32xbf16>
    %cst_11 = arith.constant dense<0.000000e+00> : vector<2x128xf32>
    %31 = tpu.matmul %30, %3, %cst_11 {dimension_numbers = #tpu.dot_dimension_numbers<[1], [0], [0], [1], [0, 0, 1, 1], [], []>} : vector<2x32xbf16>, vector<32x128xbf16>, vector<2x128xf32> -> vector<2x128xf32>
    %32 = arith.addf %10, %31 : vector<2x128xf32>
    %33 = arith.negf %32 : vector<2x128xf32>
    %34 = math.exp %33 : vector<2x128xf32>
    %cst_12 = arith.constant 1.000000e+00 : f32
    %35 = vector.broadcast %cst_12 : f32 to vector<2x128xf32>
    %36 = arith.addf %35, %34 : vector<2x128xf32>
    %37 = arith.divf %35, %36 : vector<2x128xf32>
    %38 = math.tanh %32 : vector<2x128xf32>
    %39 = arith.select %16, %38, %37 : vector<2x128xi1>, vector<2x128xf32>
    %40 = vector.extract_strided_slice %39 {offsets = [0, 0], sizes = [2, 32], strides = [1, 1]} : vector<2x128xf32> to vector<2x32xf32>
    %41 = vector.extract_strided_slice %39 {offsets = [0, 32], sizes = [2, 32], strides = [1, 1]} : vector<2x128xf32> to vector<2x32xf32>
    %42 = vector.extract_strided_slice %39 {offsets = [0, 64], sizes = [2, 32], strides = [1, 1]} : vector<2x128xf32> to vector<2x32xf32>
    %43 = vector.extract_strided_slice %39 {offsets = [0, 96], sizes = [2, 32], strides = [1, 1]} : vector<2x128xf32> to vector<2x32xf32>
    %44 = arith.mulf %40, %42 : vector<2x32xf32>
    %45 = arith.mulf %41, %27 : vector<2x32xf32>
    %46 = arith.addf %45, %44 : vector<2x32xf32>
    %47 = math.tanh %46 : vector<2x32xf32>
    %48 = arith.mulf %43, %47 : vector<2x32xf32>
    %49 = arith.truncf %48 : vector<2x32xf32> to vector<2x32xbf16>
    %cst_13 = arith.constant dense<0.000000e+00> : vector<2x128xf32>
    %50 = tpu.matmul %49, %3, %cst_13 {dimension_numbers = #tpu.dot_dimension_numbers<[1], [0], [0], [1], [0, 0, 1, 1], [], []>} : vector<2x32xbf16>, vector<32x128xbf16>, vector<2x128xf32> -> vector<2x128xf32>
    %51 = arith.addf %10, %50 : vector<2x128xf32>
    %52 = arith.negf %51 : vector<2x128xf32>
    %53 = math.exp %52 : vector<2x128xf32>
    %cst_14 = arith.constant 1.000000e+00 : f32
    %54 = vector.broadcast %cst_14 : f32 to vector<2x128xf32>
    %55 = arith.addf %54, %53 : vector<2x128xf32>
    %56 = arith.divf %54, %55 : vector<2x128xf32>
    %57 = math.tanh %51 : vector<2x128xf32>
    %58 = arith.select %16, %57, %56 : vector<2x128xi1>, vector<2x128xf32>
    %59 = vector.extract_strided_slice %58 {offsets = [0, 0], sizes = [2, 32], strides = [1, 1]} : vector<2x128xf32> to vector<2x32xf32>
    %60 = vector.extract_strided_slice %58 {offsets = [0, 32], sizes = [2, 32], strides = [1, 1]} : vector<2x128xf32> to vector<2x32xf32>
    %61 = vector.extract_strided_slice %58 {offsets = [0, 64], sizes = [2, 32], strides = [1, 1]} : vector<2x128xf32> to vector<2x32xf32>
    %62 = vector.extract_strided_slice %58 {offsets = [0, 96], sizes = [2, 32], strides = [1, 1]} : vector<2x128xf32> to vector<2x32xf32>
    %63 = arith.mulf %59, %61 : vector<2x32xf32>
    %64 = arith.mulf %60, %46 : vector<2x32xf32>
    %65 = arith.addf %64, %63 : vector<2x32xf32>
    %66 = math.tanh %65 : vector<2x32xf32>
    %67 = arith.mulf %62, %66 : vector<2x32xf32>
    %68 = arith.truncf %67 : vector<2x32xf32> to vector<2x32xbf16>
    %cst_15 = arith.constant dense<0.000000e+00> : vector<2x128xf32>
    %69 = tpu.matmul %68, %3, %cst_15 {dimension_numbers = #tpu.dot_dimension_numbers<[1], [0], [0], [1], [0, 0, 1, 1], [], []>} : vector<2x32xbf16>, vector<32x128xbf16>, vector<2x128xf32> -> vector<2x128xf32>
    %70 = arith.addf %10, %69 : vector<2x128xf32>
    %71 = arith.negf %70 : vector<2x128xf32>
    %72 = math.exp %71 : vector<2x128xf32>
    %cst_16 = arith.constant 1.000000e+00 : f32
    %73 = vector.broadcast %cst_16 : f32 to vector<2x128xf32>
    %74 = arith.addf %73, %72 : vector<2x128xf32>
    %75 = arith.divf %73, %74 : vector<2x128xf32>
    %76 = math.tanh %70 : vector<2x128xf32>
    %77 = arith.select %16, %76, %75 : vector<2x128xi1>, vector<2x128xf32>
    %78 = vector.extract_strided_slice %77 {offsets = [0, 0], sizes = [2, 32], strides = [1, 1]} : vector<2x128xf32> to vector<2x32xf32>
    %79 = vector.extract_strided_slice %77 {offsets = [0, 32], sizes = [2, 32], strides = [1, 1]} : vector<2x128xf32> to vector<2x32xf32>
    %80 = vector.extract_strided_slice %77 {offsets = [0, 64], sizes = [2, 32], strides = [1, 1]} : vector<2x128xf32> to vector<2x32xf32>
    %81 = vector.extract_strided_slice %77 {offsets = [0, 96], sizes = [2, 32], strides = [1, 1]} : vector<2x128xf32> to vector<2x32xf32>
    %82 = arith.mulf %78, %80 : vector<2x32xf32>
    %83 = arith.mulf %79, %65 : vector<2x32xf32>
    %84 = arith.addf %83, %82 : vector<2x32xf32>
    %85 = math.tanh %84 : vector<2x32xf32>
    %86 = arith.mulf %81, %85 : vector<2x32xf32>
    %87 = arith.truncf %86 : vector<2x32xf32> to vector<2x32xbf16>
    %cst_17 = arith.constant dense<0.000000e+00> : vector<2x128xf32>
    %88 = tpu.matmul %87, %3, %cst_17 {dimension_numbers = #tpu.dot_dimension_numbers<[1], [0], [0], [1], [0, 0, 1, 1], [], []>} : vector<2x32xbf16>, vector<32x128xbf16>, vector<2x128xf32> -> vector<2x128xf32>
    %89 = arith.addf %10, %88 : vector<2x128xf32>
    %90 = arith.negf %89 : vector<2x128xf32>
    %91 = math.exp %90 : vector<2x128xf32>
    %cst_18 = arith.constant 1.000000e+00 : f32
    %92 = vector.broadcast %cst_18 : f32 to vector<2x128xf32>
    %93 = arith.addf %92, %91 : vector<2x128xf32>
    %94 = arith.divf %92, %93 : vector<2x128xf32>
    %95 = math.tanh %89 : vector<2x128xf32>
    %96 = arith.select %16, %95, %94 : vector<2x128xi1>, vector<2x128xf32>
    %97 = vector.extract_strided_slice %96 {offsets = [0, 0], sizes = [2, 32], strides = [1, 1]} : vector<2x128xf32> to vector<2x32xf32>
    %98 = vector.extract_strided_slice %96 {offsets = [0, 32], sizes = [2, 32], strides = [1, 1]} : vector<2x128xf32> to vector<2x32xf32>
    %99 = vector.extract_strided_slice %96 {offsets = [0, 64], sizes = [2, 32], strides = [1, 1]} : vector<2x128xf32> to vector<2x32xf32>
    %100 = vector.extract_strided_slice %96 {offsets = [0, 96], sizes = [2, 32], strides = [1, 1]} : vector<2x128xf32> to vector<2x32xf32>
    %101 = arith.mulf %97, %99 : vector<2x32xf32>
    %102 = arith.mulf %98, %84 : vector<2x32xf32>
    %103 = arith.addf %102, %101 : vector<2x32xf32>
    %104 = math.tanh %103 : vector<2x32xf32>
    %105 = arith.mulf %100, %104 : vector<2x32xf32>
    %106 = arith.truncf %105 : vector<2x32xf32> to vector<2x32xbf16>
    %cst_19 = arith.constant dense<0.000000e+00> : vector<2x128xf32>
    %107 = tpu.matmul %106, %3, %cst_19 {dimension_numbers = #tpu.dot_dimension_numbers<[1], [0], [0], [1], [0, 0, 1, 1], [], []>} : vector<2x32xbf16>, vector<32x128xbf16>, vector<2x128xf32> -> vector<2x128xf32>
    %108 = arith.addf %10, %107 : vector<2x128xf32>
    %109 = arith.negf %108 : vector<2x128xf32>
    %110 = math.exp %109 : vector<2x128xf32>
    %cst_20 = arith.constant 1.000000e+00 : f32
    %111 = vector.broadcast %cst_20 : f32 to vector<2x128xf32>
    %112 = arith.addf %111, %110 : vector<2x128xf32>
    %113 = arith.divf %111, %112 : vector<2x128xf32>
    %114 = math.tanh %108 : vector<2x128xf32>
    %115 = arith.select %16, %114, %113 : vector<2x128xi1>, vector<2x128xf32>
    %116 = vector.extract_strided_slice %115 {offsets = [0, 0], sizes = [2, 32], strides = [1, 1]} : vector<2x128xf32> to vector<2x32xf32>
    %117 = vector.extract_strided_slice %115 {offsets = [0, 32], sizes = [2, 32], strides = [1, 1]} : vector<2x128xf32> to vector<2x32xf32>
    %118 = vector.extract_strided_slice %115 {offsets = [0, 64], sizes = [2, 32], strides = [1, 1]} : vector<2x128xf32> to vector<2x32xf32>
    %119 = vector.extract_strided_slice %115 {offsets = [0, 96], sizes = [2, 32], strides = [1, 1]} : vector<2x128xf32> to vector<2x32xf32>
    %120 = arith.mulf %116, %118 : vector<2x32xf32>
    %121 = arith.mulf %117, %103 : vector<2x32xf32>
    %122 = arith.addf %121, %120 : vector<2x32xf32>
    %123 = math.tanh %122 : vector<2x32xf32>
    %124 = arith.mulf %119, %123 : vector<2x32xf32>
    %125 = arith.truncf %124 : vector<2x32xf32> to vector<2x32xbf16>
    %cst_21 = arith.constant dense<0.000000e+00> : vector<2x128xf32>
    %126 = tpu.matmul %125, %3, %cst_21 {dimension_numbers = #tpu.dot_dimension_numbers<[1], [0], [0], [1], [0, 0, 1, 1], [], []>} : vector<2x32xbf16>, vector<32x128xbf16>, vector<2x128xf32> -> vector<2x128xf32>
    %127 = arith.addf %10, %126 : vector<2x128xf32>
    %128 = arith.negf %127 : vector<2x128xf32>
    %129 = math.exp %128 : vector<2x128xf32>
    %cst_22 = arith.constant 1.000000e+00 : f32
    %130 = vector.broadcast %cst_22 : f32 to vector<2x128xf32>
    %131 = arith.addf %130, %129 : vector<2x128xf32>
    %132 = arith.divf %130, %131 : vector<2x128xf32>
    %133 = math.tanh %127 : vector<2x128xf32>
    %134 = arith.select %16, %133, %132 : vector<2x128xi1>, vector<2x128xf32>
    %135 = vector.extract_strided_slice %134 {offsets = [0, 0], sizes = [2, 32], strides = [1, 1]} : vector<2x128xf32> to vector<2x32xf32>
    %136 = vector.extract_strided_slice %134 {offsets = [0, 32], sizes = [2, 32], strides = [1, 1]} : vector<2x128xf32> to vector<2x32xf32>
    %137 = vector.extract_strided_slice %134 {offsets = [0, 64], sizes = [2, 32], strides = [1, 1]} : vector<2x128xf32> to vector<2x32xf32>
    %138 = vector.extract_strided_slice %134 {offsets = [0, 96], sizes = [2, 32], strides = [1, 1]} : vector<2x128xf32> to vector<2x32xf32>
    %139 = arith.mulf %135, %137 : vector<2x32xf32>
    %140 = arith.mulf %136, %122 : vector<2x32xf32>
    %141 = arith.addf %140, %139 : vector<2x32xf32>
    %142 = math.tanh %141 : vector<2x32xf32>
    %143 = arith.mulf %138, %142 : vector<2x32xf32>
    %144 = arith.truncf %143 : vector<2x32xf32> to vector<2x32xbf16>
    %cst_23 = arith.constant dense<0.000000e+00> : vector<2x128xf32>
    %145 = tpu.matmul %144, %3, %cst_23 {dimension_numbers = #tpu.dot_dimension_numbers<[1], [0], [0], [1], [0, 0, 1, 1], [], []>} : vector<2x32xbf16>, vector<32x128xbf16>, vector<2x128xf32> -> vector<2x128xf32>
    %146 = arith.addf %10, %145 : vector<2x128xf32>
    %147 = arith.negf %146 : vector<2x128xf32>
    %148 = math.exp %147 : vector<2x128xf32>
    %cst_24 = arith.constant 1.000000e+00 : f32
    %149 = vector.broadcast %cst_24 : f32 to vector<2x128xf32>
    %150 = arith.addf %149, %148 : vector<2x128xf32>
    %151 = arith.divf %149, %150 : vector<2x128xf32>
    %152 = math.tanh %146 : vector<2x128xf32>
    %153 = arith.select %16, %152, %151 : vector<2x128xi1>, vector<2x128xf32>
    %154 = vector.extract_strided_slice %153 {offsets = [0, 0], sizes = [2, 32], strides = [1, 1]} : vector<2x128xf32> to vector<2x32xf32>
    %155 = vector.extract_strided_slice %153 {offsets = [0, 32], sizes = [2, 32], strides = [1, 1]} : vector<2x128xf32> to vector<2x32xf32>
    %156 = vector.extract_strided_slice %153 {offsets = [0, 64], sizes = [2, 32], strides = [1, 1]} : vector<2x128xf32> to vector<2x32xf32>
    %157 = vector.extract_strided_slice %153 {offsets = [0, 96], sizes = [2, 32], strides = [1, 1]} : vector<2x128xf32> to vector<2x32xf32>
    %158 = arith.mulf %154, %156 : vector<2x32xf32>
    %159 = arith.mulf %155, %141 : vector<2x32xf32>
    %160 = arith.addf %159, %158 : vector<2x32xf32>
    %161 = math.tanh %160 : vector<2x32xf32>
    %162 = arith.mulf %157, %161 : vector<2x32xf32>
    %163 = arith.truncf %162 : vector<2x32xf32> to vector<2x32xbf16>
    %c0_25 = arith.constant 0 : index
    %c0_26 = arith.constant 0 : index
    %164 = vector.load %arg2[%c0_25, %c0_26] : memref<32x16xbf16, #tpu.memory_space<vmem>>, vector<32x16xbf16>
    %cst_27 = arith.constant dense<0.000000e+00> : vector<2x16xf32>
    %165 = tpu.matmul %30, %164, %cst_27 {dimension_numbers = #tpu.dot_dimension_numbers<[1], [0], [0], [1], [0, 0, 1, 1], [], []>} : vector<2x32xbf16>, vector<32x16xbf16>, vector<2x16xf32> -> vector<2x16xf32>
    %cst_28 = arith.constant dense<0.000000e+00> : vector<2x16xf32>
    %166 = tpu.matmul %49, %164, %cst_28 {dimension_numbers = #tpu.dot_dimension_numbers<[1], [0], [0], [1], [0, 0, 1, 1], [], []>} : vector<2x32xbf16>, vector<32x16xbf16>, vector<2x16xf32> -> vector<2x16xf32>
    %cst_29 = arith.constant dense<0.000000e+00> : vector<2x16xf32>
    %167 = tpu.matmul %68, %164, %cst_29 {dimension_numbers = #tpu.dot_dimension_numbers<[1], [0], [0], [1], [0, 0, 1, 1], [], []>} : vector<2x32xbf16>, vector<32x16xbf16>, vector<2x16xf32> -> vector<2x16xf32>
    %cst_30 = arith.constant dense<0.000000e+00> : vector<2x16xf32>
    %168 = tpu.matmul %87, %164, %cst_30 {dimension_numbers = #tpu.dot_dimension_numbers<[1], [0], [0], [1], [0, 0, 1, 1], [], []>} : vector<2x32xbf16>, vector<32x16xbf16>, vector<2x16xf32> -> vector<2x16xf32>
    %cst_31 = arith.constant dense<0.000000e+00> : vector<2x16xf32>
    %169 = tpu.matmul %106, %164, %cst_31 {dimension_numbers = #tpu.dot_dimension_numbers<[1], [0], [0], [1], [0, 0, 1, 1], [], []>} : vector<2x32xbf16>, vector<32x16xbf16>, vector<2x16xf32> -> vector<2x16xf32>
    %cst_32 = arith.constant dense<0.000000e+00> : vector<2x16xf32>
    %170 = tpu.matmul %125, %164, %cst_32 {dimension_numbers = #tpu.dot_dimension_numbers<[1], [0], [0], [1], [0, 0, 1, 1], [], []>} : vector<2x32xbf16>, vector<32x16xbf16>, vector<2x16xf32> -> vector<2x16xf32>
    %cst_33 = arith.constant dense<0.000000e+00> : vector<2x16xf32>
    %171 = tpu.matmul %144, %164, %cst_33 {dimension_numbers = #tpu.dot_dimension_numbers<[1], [0], [0], [1], [0, 0, 1, 1], [], []>} : vector<2x32xbf16>, vector<32x16xbf16>, vector<2x16xf32> -> vector<2x16xf32>
    %cst_34 = arith.constant dense<0.000000e+00> : vector<2x16xf32>
    %172 = tpu.matmul %163, %164, %cst_34 {dimension_numbers = #tpu.dot_dimension_numbers<[1], [0], [0], [1], [0, 0, 1, 1], [], []>} : vector<2x32xbf16>, vector<32x16xbf16>, vector<2x16xf32> -> vector<2x16xf32>
    %173 = tpu.concatenate %165, %166, %167, %168, %169, %170, %171, %172 in 1 : vector<2x16xf32>, vector<2x16xf32>, vector<2x16xf32>, vector<2x16xf32>, vector<2x16xf32>, vector<2x16xf32>, vector<2x16xf32>, vector<2x16xf32> -> vector<2x128xf32>
    %174 = vector.broadcast %5 : vector<1x128xf32> to vector<2x128xf32>
    %175 = arith.addf %173, %174 : vector<2x128xf32>
    %c0_35 = arith.constant 0 : index
    %c0_36 = arith.constant 0 : index
    %176 = vector.load %arg4[%c0_35, %c0_36] : memref<2x128xf32, #tpu.memory_space<vmem>>, vector<2x128xf32>
    tpu.vector_store %arg4[%c0_35, %c0_36], %175 {strides = array<i32>} : memref<2x128xf32, #tpu.memory_space<vmem>>, vector<2x128xf32>,
    return
  }
}

</mosaic_0001>

<bundles_post_ra>
// kernel: tpu_custom_call.1
= control target key start
LH: loop header
LB: loop body
LE: loop exit
PB: predicated region body
PF: predicated region fallthrough
CT: control target
= control target key end

     0   :  { %9 = vsyncpa [#allocation3], 0  ;;  %s1700_s0 = inlined_call_operand.vmem [shape: f32[2,32], index: 0, kind: input, shape index: {}]   ;;  %s1701_s1 = inlined_call_operand.hbm [shape: bf16[2,32,128], index: 1, kind: input, shape index: {}]   ;;  %s1702_s2 = inlined_call_operand.vmem [shape: bf16[32,16], index: 2, kind: input, shape index: {}]   ;;  %s1703_s3 = inlined_call_operand.vmem [shape: f32[2,128], index: 3, kind: input, shape index: {}]   ;;  %s1704_s4 = inlined_call_operand.hbm [shape: f32[2,128], index: 4, kind: output, shape index: {}]  }
   0x1   :  { %10 = vsyncpa [#allocation4], 0  ;;  %s1400_s15 = smov [#allocation2]   ;;  %s1352_s19 = scalar_lea.hbm %s1701_s1, 512 }
   0x2   :  { %s18_s16 = sshll.u32 %s1400_s15, 4  ;;  %p1353_p0 = scmp.ne.s32.totalorder %s1701_s1, %s1352_s19  ;;  %s19_s16 = int_to_ptr.vmem [resolvable:$true] %s18_s16 }
   0x3   :  { %p1356_p1 = scmp.lt.u32.totalorder %s1352_s19, %s1701_s1 }
   0x5   :  { %p1358_p2 = pnand %p1356_p1, %p1353_p0 }
   0x7   :  { %1361 = shalt.err (!%p1358_p2)
}
   0x8   :  { %s1362_s24 = scalar_lea.vmem %s19_s16, 512  ;;  %p1367_p4 = scmp.lt.s32.totalorder %s19_s16, %s19_s16 }
   0x9   :  { %p1363_p3 = scmp.ne.s32.totalorder %s19_s16, %s1362_s24  ;;  %p1368_p5 = scmp.lt.s32.totalorder %s1362_s24, %s1362_s24 }
   0xb   :  { %p1369_p6 = por %p1368_p5, %p1367_p4 }
   0xd   :  { %p1370_p7 = pnand %p1369_p6, %p1363_p3 }
   0xf   :  { %1373 = shalt.err (!%p1370_p7)
}
  0x10   :  { %s1401_s25 = smov 64   ;;  %s1402_s26 = smov 4  }
  0x11   :  { %24 = dma.hbm_to_vmem [thread:$0]  %s1701_s1, 512, %s19_s16, [#allocation3], %s1401_s25, %s1401_s25, %s1402_s26  }
  0x12   :  { %1396 = dma.done.wait [#allocation3], 512  }
  0x13   :  { %1397 = vsyncadd [#allocation3], 4294966784  ;;  %v1403_v0 = vmov 0.0   ;;  %vm1404_vm0 = vmmov 0   ;;  %v1282_v1 = vld [vmem:[#allocation2] sm:$0xff]   ;;  %v1283_v2 = vld [vmem:[#allocation2 + $0x8] sm:$0xff]   ;;  %v106_v13 = vlaneseq }
  0x14   :  { %1142 = vmatprep.subr.bf16.mxu0 %v1403_v0  ;;  %1146 = vmatprep.mubr.msk.bf16.mxu0 %vm1404_vm0, %v1403_v0  ;;  %v44_v3 = vld [vmem:[%s1700_s0] sm:$0x3]  ;;  %vm62_vm1 = vcmask 261120   ;;  %v1479_v22 = vld [vmem:[#allocation2 + $0x10] sm:$0xff]   ;;  %v1482_v23 = vld [vmem:[#allocation2 + $0x18] sm:$0xff]   ;;  %s1405_s0 = smov 96  }
  0x15   :  { %1150 = vmatprep.subr.bf16.mxu1 %v1403_v0  ;;  %1154 = vmatprep.mubr.msk.bf16.mxu1 %vm1404_vm0, %v1403_v0  ;;  %v45_v4 = vpack.c.bf16 %v44_v3, %v44_v3  ;;  %v1062_v5 = vld [vmem:[%s1703_s3] ss:$0 sm:$0xff]  ;;  %v107_v15 = vand.u32 127, %v106_v13  ;;  %s1406_s6 = smov 32   ;;  %s1408_s11 = smov 48   ;;  %vm1028_vm5 = vcmask 130048  }
  0x16   :  { %1143 = vmatpush3.bf16.msra.mxu0 %v1282_v1  ;;  %1151 = vmatpush3.bf16.msra.mxu1 %v1479_v22  ;;  %s1409_s12 = smov 80   ;;  %s1410_s13 = smov 112   ;;  %vm1031_vm6 = vcmask 392192   ;;  %vm1033_vm7 = vcmask 523264   ;;  %vm1035_vm8 = vcmask 654336   ;;  %vm1037_vm9 = vcmask 785408  }
  0x17   :  { %1144 = vmatprep.subr.bf16.mxu0 %v1403_v0  ;;  %vm108_vm2 = vcmp.ge.s32.totalorder %v107_v15, 64  ;;  %vm109_vm3 = vcmp.lt.s32.totalorder %v107_v15, 96  ;;  %1152 = vmatprep.subr.bf16.mxu1 %v1403_v0  ;;  %vm1039_vm10 = vcmask 916480   ;;  %s1411_s16 = smov [#allocation5]  }
  0x18   :  { %vm1472_vm4 = vmand %vm108_vm2, %vm109_vm3  ;;  %s1053_s17 = sshll.u32 %s1411_s16, 4  ;;  %s1054_s17 = int_to_ptr.vmem [resolvable:$true] %s1053_s17 }
  0x19   :  { %s1374_s18 = scalar_lea.vmem %s1054_s17, 32  ;;  %p1379_p9 = scmp.lt.s32.totalorder %s1054_s17, %s1054_s17 }
  0x1a   :  { %1145 = vmatpush3.bf16.msra.mxu0 %v1283_v2  ;;  %1153 = vmatpush3.bf16.msra.mxu1 %v1482_v23  ;;  %p1375_p8 = scmp.ne.s32.totalorder %s1054_s17, %s1374_s18  ;;  %p1380_p10 = scmp.lt.s32.totalorder %s1374_s18, %s1374_s18 }
  0x1b   :  { %1158 = vmatprep.subr.bf16.mxu0 %v1403_v0  ;;  %1166 = vmatprep.subr.bf16.mxu1 %v1403_v0 }
  0x1c   :  { %p1381_p11 = por %p1380_p10, %p1379_p9 }
  0x1d   :  { %1147 = vmatmul.mubr.msk.bf16.vlgmr.msra.gmra.mrb[0].mxu0 %vm62_vm1, %v45_v4 }
  0x1e   :  { %1162 = vmatprep.mubr.msk.bf16.mxu0 %vm1404_vm0, %v1403_v0  ;;  %1159 = vmatpush3.bf16.msra.mxu0 %v1479_v22  ;;  %p1382_p12 = pnand %p1381_p11, %p1375_p8 }
  0x1f   :  { %1160 = vmatprep.subr.bf16.mxu0 %v1403_v0 }
  0x22   :  { %1161 = vmatpush3.bf16.msra.mxu0 %v1482_v23 }
  0x23   :  { %1174 = vmatprep.subr.bf16.mxu0 %v1403_v0 }
  0xf0   :  { %v100_v6 = vpop.f32.mrb[0].mxu0 }
  0xf1   :  { %v1468_v7 = vadd.f32 %v1062_v5, %v100_v6  ;;  %v1148_v8 = vpop.f32.mrb[1].mxu0 }
  0xf2   :  { %v103_v9 = vpop.f32.mrb[2].mxu0 }
  0xf3   :  { %v1149_v10 = vpop.f32.mrb[3].mxu0  ;;  %v1066_v11 = vmul.f32 -1.442695, %v1468_v7 }
  0xf5   :  { %1288 = vpow2.f32 %v1066_v11 }
  0xf6   :  { %1290 = vtanh.f32 %v1468_v7 }
  0xff   :  { %v1289_v12 = vpop.eup %1288 }
 0x100   :  { %v114_v14 = vadd.f32 1.0, %v1289_v12  ;;  %v1291_v17 = vpop.eup %1290 }
 0x102   :  { %1292 = vrcp.f32 %v114_v14 }
 0x10c   :  { %v1293_v18 = vpop.eup %1292 }
 0x10d   :  { %v118_v19 = vsel %vm1472_vm4, %v1291_v17, %v1293_v18 }
 0x10e   :  { %120 = vrot.lane.b32.xlu0 %v118_v19, %s1401_s25 }
 0x180   :  { %v121_v20 = vpop.permute.xlu0 %120 }
 0x181   :  { %v123_v21 = vmul.f32 %v121_v20, %v118_v19 }
 0x183   :  { %1294 = vtanh.f32 %v123_v21 }
 0x18d   :  { %v1295_v24 = vpop.eup %1294 }
 0x18e   :  { %126 = vrot.lane.b32.xlu0 %v1295_v24, %s1405_s0 }
 0x192   :  { %204 = vrot.lane.b32.xlu0 %v123_v21, %s1406_s6 }
 0x200   :  { %v127_v25 = vpop.permute.xlu0 %126 }
 0x201   :  { %v129_v26 = vmul.f32 %v127_v25, %v118_v19 }
 0x203   :  { %v130_v27 = vpack.c.bf16 %v129_v26, %v129_v26 }
 0x204   :  { %v205_v42 = vpop.permute.xlu0 %204 }
 0x205   :  { %132 = vrot.lane.b32.xlu1 %v130_v27, %s1406_s6 }
 0x277   :  { %v1494_v28 = vpop.permute.xlu1 %132 }
 0x278   :  { %1155 = vmatmul.mubr.msk.bf16.vlgmr.msra.gmra.mrb[0].mxu1 %vm62_vm1, %v1494_v28 }
 0x279   :  { %1167 = vmatpush3.bf16.msra.mxu1 %v1479_v22  ;;  %1170 = vmatprep.mubr.msk.bf16.mxu1 %vm1404_vm0, %v1403_v0 }
 0x27a   :  { %1168 = vmatprep.subr.bf16.mxu1 %v1403_v0 }
 0x27d   :  { %1169 = vmatpush3.bf16.msra.mxu1 %v1482_v23 }
 0x27e   :  { %1182 = vmatprep.subr.bf16.mxu1 %v1403_v0 }
 0x34b   :  { %v183_v29 = vpop.f32.mrb[0].mxu1 }
 0x34c   :  { %v189_v30 = vadd.f32 %v183_v29, %v1468_v7  ;;  %v1156_v31 = vpop.f32.mrb[1].mxu1 }
 0x34d   :  { %v186_v32 = vpop.f32.mrb[2].mxu1 }
 0x34e   :  { %v1070_v33 = vmul.f32 -1.442695, %v189_v30  ;;  %v1157_v34 = vpop.f32.mrb[3].mxu1 }
 0x350   :  { %1296 = vpow2.f32 %v1070_v33 }
 0x351   :  { %1298 = vtanh.f32 %v189_v30 }
 0x35a   :  { %v1297_v35 = vpop.eup %1296 }
 0x35b   :  { %v193_v36 = vadd.f32 1.0, %v1297_v35  ;;  %v1299_v37 = vpop.eup %1298 }
 0x35d   :  { %1300 = vrcp.f32 %v193_v36 }
 0x367   :  { %v1301_v38 = vpop.eup %1300 }
 0x368   :  { %v197_v39 = vsel %vm1472_vm4, %v1299_v37, %v1301_v38 }
 0x369   :  { %199 = vrot.lane.b32.xlu1 %v197_v39, %s1401_s25  ;;  %v207_v43 = vmul.f32 %v205_v42, %v197_v39 }
 0x3db   :  { %v200_v40 = vpop.permute.xlu1 %199 }
 0x3dc   :  { %v202_v41 = vmul.f32 %v200_v40, %v197_v39 }
 0x3de   :  { %209 = vrot.lane.b32.xlu1 %v202_v41, %s1406_s6 }
 0x450   :  { %v210_v44 = vpop.permute.xlu1 %209 }
 0x451   :  { %v212_v45 = vadd.f32 %v210_v44, %v207_v43 }
 0x453   :  { %1302 = vtanh.f32 %v212_v45 }
 0x45d   :  { %v1303_v46 = vpop.eup %1302 }
 0x45e   :  { %215 = vrot.lane.b32.xlu0 %v1303_v46, %s1401_s25 }
 0x4d0   :  { %v216_v47 = vpop.permute.xlu0 %215 }
 0x4d1   :  { %v218_v48 = vmul.f32 %v216_v47, %v197_v39 }
 0x4d3   :  { %v219_v49 = vpack.c.bf16 %v218_v48, %v218_v48 }
 0x4d5   :  { %221 = vrot.lane.b32.xlu1 %v219_v49, %s1406_s6 }
 0x547   :  { %v1511_v50 = vpop.permute.xlu1 %221 }
 0x548   :  { %1163 = vmatmul.mubr.msk.bf16.vlgmr.msra.gmra.mrb[4].mxu0 %vm62_vm1, %v1511_v50 }
 0x549   :  { %1175 = vmatpush3.bf16.msra.mxu0 %v1479_v22  ;;  %1178 = vmatprep.mubr.msk.bf16.mxu0 %vm1404_vm0, %v1403_v0 }
 0x54a   :  { %1176 = vmatprep.subr.bf16.mxu0 %v1403_v0 }
 0x54d   :  { %1177 = vmatpush3.bf16.msra.mxu0 %v1482_v23 }
 0x54e   :  { %1190 = vmatprep.subr.bf16.mxu0 %v1403_v0 }
 0x61b   :  { %v260_v51 = vpop.f32.mrb[4].mxu0 }
 0x61c   :  { %v266_v52 = vadd.f32 %v260_v51, %v1468_v7  ;;  %v1164_v53 = vpop.f32.mrb[5].mxu0 }
 0x61d   :  { %v263_v54 = vpop.f32.mrb[6].mxu0 }
 0x61e   :  { %v1072_v55 = vmul.f32 -1.442695, %v266_v52  ;;  %v1165_v56 = vpop.f32.mrb[7].mxu0 }
 0x620   :  { %1304 = vpow2.f32 %v1072_v55 }
 0x621   :  { %1306 = vtanh.f32 %v266_v52 }
 0x62a   :  { %v1305_v57 = vpop.eup %1304 }
 0x62b   :  { %v270_v58 = vadd.f32 1.0, %v1305_v57  ;;  %v1307_v59 = vpop.eup %1306 }
 0x62d   :  { %1308 = vrcp.f32 %v270_v58 }
 0x637   :  { %v1309_v60 = vpop.eup %1308 }
 0x638   :  { %v274_v61 = vsel %vm1472_vm4, %v1307_v59, %v1309_v60 }
 0x639   :  { %276 = vrot.lane.b32.xlu0 %v274_v61, %s1401_s25  ;;  %v280_v1 = vmul.f32 %v274_v61, %v212_v45 }
 0x6ab   :  { %v277_v62 = vpop.permute.xlu0 %276 }
 0x6ac   :  { %v279_v63 = vmul.f32 %v277_v62, %v274_v61 }
 0x6ae   :  { %282 = vrot.lane.b32.xlu1 %v279_v63, %s1406_s6 }
 0x720   :  { %v283_v2 = vpop.permute.xlu1 %282 }
 0x721   :  { %v285_v3 = vadd.f32 %v283_v2, %v280_v1 }
 0x723   :  { %1310 = vtanh.f32 %v285_v3 }
 0x72d   :  { %v1311_v4 = vpop.eup %1310 }
 0x72e   :  { %288 = vrot.lane.b32.xlu0 %v1311_v4, %s1401_s25 }
 0x7a0   :  { %v289_v5 = vpop.permute.xlu0 %288 }
 0x7a1   :  { %v291_v6 = vmul.f32 %v289_v5, %v274_v61 }
 0x7a3   :  { %v292_v8 = vpack.c.bf16 %v291_v6, %v291_v6 }
 0x7a5   :  { %294 = vrot.lane.b32.xlu1 %v292_v8, %s1406_s6 }
 0x817   :  { %v1528_v9 = vpop.permute.xlu1 %294 }
 0x818   :  { %1171 = vmatmul.mubr.msk.bf16.vlgmr.msra.gmra.mrb[4].mxu1 %vm62_vm1, %v1528_v9 }
 0x819   :  { %1183 = vmatpush3.bf16.msra.mxu1 %v1479_v22  ;;  %1186 = vmatprep.mubr.msk.bf16.mxu1 %vm1404_vm0, %v1403_v0 }
 0x81a   :  { %1184 = vmatprep.subr.bf16.mxu1 %v1403_v0 }
 0x81d   :  { %1185 = vmatpush3.bf16.msra.mxu1 %v1482_v23 }
 0x81e   :  { %1198 = vmatprep.subr.bf16.mxu1 %v1403_v0 }
 0x8eb   :  { %v333_v10 = vpop.f32.mrb[4].mxu1 }
 0x8ec   :  { %v339_v11 = vadd.f32 %v333_v10, %v1468_v7  ;;  %v1172_v12 = vpop.f32.mrb[5].mxu1 }
 0x8ed   :  { %v336_v13 = vpop.f32.mrb[6].mxu1 }
 0x8ee   :  { %v1074_v14 = vmul.f32 -1.442695, %v339_v11  ;;  %v1173_v15 = vpop.f32.mrb[7].mxu1 }
 0x8f0   :  { %1312 = vpow2.f32 %v1074_v14  ;;  %v1582_v14 = vld [vmem:[%s1702_s2] sm:$0xff]  }
 0x8f1   :  { %1314 = vtanh.f32 %v339_v11 }
 0x8fa   :  { %v1313_v17 = vpop.eup %1312 }
 0x8fb   :  { %v343_v18 = vadd.f32 1.0, %v1313_v17  ;;  %v1315_v19 = vpop.eup %1314  ;;  %v1592_v17 = vld [vmem:[%s1702_s2 + $0x8] sm:$0xff]   ;;  %s1407_s2 = smov 16  }
 0x8fd   :  { %1316 = vrcp.f32 %v343_v18 }
 0x907   :  { %v1317_v20 = vpop.eup %1316 }
 0x908   :  { %v347_v21 = vsel %vm1472_vm4, %v1315_v19, %v1317_v20 }
 0x909   :  { %349 = vrot.lane.b32.xlu0 %v347_v21, %s1401_s25  ;;  %v353_v26 = vmul.f32 %v347_v21, %v285_v3 }
 0x97b   :  { %v350_v24 = vpop.permute.xlu0 %349 }
 0x97c   :  { %v352_v25 = vmul.f32 %v350_v24, %v347_v21 }
 0x97e   :  { %355 = vrot.lane.b32.xlu1 %v352_v25, %s1406_s6 }
 0x9f0   :  { %v356_v27 = vpop.permute.xlu1 %355 }
 0x9f1   :  { %v358_v29 = vadd.f32 %v356_v27, %v353_v26 }
 0x9f3   :  { %1318 = vtanh.f32 %v358_v29 }
 0x9fd   :  { %v1319_v30 = vpop.eup %1318 }
 0x9fe   :  { %361 = vrot.lane.b32.xlu0 %v1319_v30, %s1401_s25 }
 0xa70   :  { %v362_v31 = vpop.permute.xlu0 %361 }
 0xa71   :  { %v364_v32 = vmul.f32 %v362_v31, %v347_v21 }
 0xa73   :  { %v365_v33 = vpack.c.bf16 %v364_v32, %v364_v32 }
 0xa75   :  { %367 = vrot.lane.b32.xlu1 %v365_v33, %s1406_s6 }
 0xae7   :  { %v1545_v34 = vpop.permute.xlu1 %367 }
 0xae8   :  { %1179 = vmatmul.mubr.msk.bf16.vlgmr.msra.gmra.mrb[8].mxu0 %vm62_vm1, %v1545_v34 }
 0xae9   :  { %1191 = vmatpush3.bf16.msra.mxu0 %v1479_v22  ;;  %1194 = vmatprep.mubr.msk.bf16.mxu0 %vm1404_vm0, %v1403_v0 }
 0xaea   :  { %1192 = vmatprep.subr.bf16.mxu0 %v1403_v0 }
 0xaed   :  { %1193 = vmatpush3.bf16.msra.mxu0 %v1482_v23 }
 0xaee   :  { %1206 = vmatprep.subr.bf16.mxu0 %v1403_v0 }
 0xbbb   :  { %v406_v35 = vpop.f32.mrb[8].mxu0 }
 0xbbc   :  { %v412_v36 = vadd.f32 %v406_v35, %v1468_v7  ;;  %v1180_v37 = vpop.f32.mrb[9].mxu0 }
 0xbbd   :  { %v409_v38 = vpop.f32.mrb[10].mxu0 }
 0xbbe   :  { %v1076_v39 = vmul.f32 -1.442695, %v412_v36  ;;  %v1181_v40 = vpop.f32.mrb[11].mxu0 }
 0xbc0   :  { %1320 = vpow2.f32 %v1076_v39 }
 0xbc1   :  { %1322 = vtanh.f32 %v412_v36 }
 0xbca   :  { %v1321_v41 = vpop.eup %1320 }
 0xbcb   :  { %v416_v42 = vadd.f32 1.0, %v1321_v41  ;;  %v1323_v43 = vpop.eup %1322 }
 0xbcd   :  { %1324 = vrcp.f32 %v416_v42 }
 0xbd7   :  { %v1325_v44 = vpop.eup %1324 }
 0xbd8   :  { %v420_v45 = vsel %vm1472_vm4, %v1323_v43, %v1325_v44 }
 0xbd9   :  { %422 = vrot.lane.b32.xlu0 %v420_v45, %s1401_s25  ;;  %v426_v48 = vmul.f32 %v420_v45, %v358_v29 }
 0xc4b   :  { %v423_v46 = vpop.permute.xlu0 %422 }
 0xc4c   :  { %v425_v47 = vmul.f32 %v423_v46, %v420_v45 }
 0xc4e   :  { %428 = vrot.lane.b32.xlu1 %v425_v47, %s1406_s6 }
 0xcc0   :  { %v429_v49 = vpop.permute.xlu1 %428 }
 0xcc1   :  { %v431_v51 = vadd.f32 %v429_v49, %v426_v48 }
 0xcc3   :  { %1326 = vtanh.f32 %v431_v51 }
 0xccd   :  { %v1327_v52 = vpop.eup %1326 }
 0xcce   :  { %434 = vrot.lane.b32.xlu0 %v1327_v52, %s1401_s25 }
 0xd40   :  { %v435_v53 = vpop.permute.xlu0 %434 }
 0xd41   :  { %v437_v54 = vmul.f32 %v435_v53, %v420_v45 }
 0xd43   :  { %v438_v55 = vpack.c.bf16 %v437_v54, %v437_v54 }
 0xd45   :  { %440 = vrot.lane.b32.xlu1 %v438_v55, %s1406_s6 }
 0xdb7   :  { %v441_v56 = vpop.permute.xlu1 %440 }
 0xdb8   :  { %1187 = vmatmul.mubr.msk.bf16.vlgmr.msra.gmra.mrb[8].mxu1 %vm62_vm1, %v441_v56 }
 0xdb9   :  { %1199 = vmatpush3.bf16.msra.mxu1 %v1479_v22  ;;  %1202 = vmatprep.mubr.msk.bf16.mxu1 %vm1404_vm0, %v1403_v0 }
 0xdba   :  { %1200 = vmatprep.subr.bf16.mxu1 %v1403_v0 }
 0xdbd   :  { %1201 = vmatpush3.bf16.msra.mxu1 %v1482_v23 }
 0xdbe   :  { %1214 = vmatprep.subr.bf16.mxu1 %v1403_v0 }
 0xe8b   :  { %v479_v57 = vpop.f32.mrb[8].mxu1 }
 0xe8c   :  { %v485_v58 = vadd.f32 %v479_v57, %v1468_v7  ;;  %v1188_v59 = vpop.f32.mrb[9].mxu1 }
 0xe8d   :  { %v482_v60 = vpop.f32.mrb[10].mxu1 }
 0xe8e   :  { %v1078_v61 = vmul.f32 -1.442695, %v485_v58  ;;  %v1189_v62 = vpop.f32.mrb[11].mxu1 }
 0xe90   :  { %1328 = vpow2.f32 %v1078_v61 }
 0xe91   :  { %1330 = vtanh.f32 %v485_v58 }
 0xe9a   :  { %v1329_v63 = vpop.eup %1328 }
 0xe9b   :  { %v489_v1 = vadd.f32 1.0, %v1329_v63  ;;  %v1331_v22 = vpop.eup %1330 }
 0xe9d   :  { %1332 = vrcp.f32 %v489_v1 }
 0xea7   :  { %v1333_v2 = vpop.eup %1332 }
 0xea8   :  { %v493_v3 = vsel %vm1472_vm4, %v1331_v22, %v1333_v2 }
 0xea9   :  { %495 = vrot.lane.b32.xlu0 %v493_v3, %s1401_s25  ;;  %v499_v5 = vmul.f32 %v493_v3, %v431_v51 }
 0xf1b   :  { %v496_v23 = vpop.permute.xlu0 %495 }
 0xf1c   :  { %v498_v4 = vmul.f32 %v496_v23, %v493_v3 }
 0xf1e   :  { %501 = vrot.lane.b32.xlu1 %v498_v4, %s1406_s6 }
 0xf90   :  { %v502_v6 = vpop.permute.xlu1 %501 }
 0xf91   :  { %v1574_v8 = vadd.f32 %v502_v6, %v499_v5 }
 0xf93   :  { %1334 = vtanh.f32 %v1574_v8 }
 0xf9d   :  { %v1335_v10 = vpop.eup %1334 }
 0xf9e   :  { %507 = vrot.lane.b32.xlu0 %v1335_v10, %s1401_s25 }
0x1010   :  { %v508_v11 = vpop.permute.xlu0 %507 }
0x1011   :  { %v510_v12 = vmul.f32 %v508_v11, %v493_v3 }
0x1013   :  { %v511_v13 = vpack.c.bf16 %v510_v12, %v510_v12 }
0x1015   :  { %513 = vrot.lane.b32.xlu1 %v511_v13, %s1406_s6 }
0x1087   :  { %v1584_v15 = vpop.permute.xlu1 %513 }
0x1088   :  { %1195 = vmatmul.mubr.msk.bf16.vlgmr.msra.gmra.mrb[12].mxu0 %vm62_vm1, %v1584_v15 }
0x1089   :  { %1207 = vmatpush3.bf16.msra.mxu0 %v1582_v14  ;;  %1210 = vmatprep.mubr.msk.bf16.mxu0 %vm1404_vm0, %v1403_v0 }
0x108a   :  { %1208 = vmatprep.subr.bf16.mxu0 %v1403_v0 }
0x108d   :  { %1209 = vmatpush3.bf16.msra.mxu0 %v1592_v17 }
0x108e   :  { %1222 = vmatprep.subr.bf16.mxu0 %v1403_v0 }
0x1090   :  { %1211 = vmatmul.mubr.msk.bf16.vlgmr.msra.gmra.mrb[16].mxu0 %vm62_vm1, %v1494_v28 }
0x1091   :  { %1223 = vmatpush3.bf16.msra.mxu0 %v1582_v14  ;;  %1226 = vmatprep.mubr.msk.bf16.mxu0 %vm1404_vm0, %v1403_v0 }
0x1092   :  { %1224 = vmatprep.subr.bf16.mxu0 %v1403_v0 }
0x1095   :  { %1225 = vmatpush3.bf16.msra.mxu0 %v1592_v17 }
0x1096   :  { %1238 = vmatprep.subr.bf16.mxu0 %v1403_v0 }
0x1098   :  { %1227 = vmatmul.mubr.msk.bf16.vlgmr.msra.gmra.mrb[20].mxu0 %vm62_vm1, %v1528_v9 }
0x1099   :  { %1239 = vmatpush3.bf16.msra.mxu0 %v1582_v14  ;;  %1242 = vmatprep.mubr.msk.bf16.mxu0 %vm1404_vm0, %v1403_v0 }
0x109a   :  { %1240 = vmatprep.subr.bf16.mxu0 %v1403_v0 }
0x109d   :  { %1241 = vmatpush3.bf16.msra.mxu0 %v1592_v17 }
0x109e   :  { %1254 = vmatprep.subr.bf16.mxu0 %v1403_v0 }
0x10a0   :  { %1243 = vmatmul.mubr.msk.bf16.vlgmr.msra.gmra.mrb[24].mxu0 %vm62_vm1, %v441_v56 }
0x10a1   :  { %1255 = vmatpush3.bf16.msra.mxu0 %v1582_v14  ;;  %1258 = vmatprep.mubr.msk.bf16.mxu0 %vm1404_vm0, %v1403_v0 }
0x10a2   :  { %1256 = vmatprep.subr.bf16.mxu0 %v1403_v0 }
0x10a5   :  { %1257 = vmatpush3.bf16.msra.mxu0 %v1592_v17 }
0x115b   :  { %v552_v28 = vpop.f32.mrb[12].mxu0 }
0x115c   :  { %v558_v9 = vadd.f32 %v552_v28, %v1468_v7  ;;  %v1196_v18 = vpop.f32.mrb[13].mxu0 }
0x115d   :  { %v555_v19 = vpop.f32.mrb[14].mxu0 }
0x115e   :  { %v1080_v20 = vmul.f32 -1.442695, %v558_v9  ;;  %v1197_v21 = vpop.f32.mrb[15].mxu0 }
0x1160   :  { %1336 = vpow2.f32 %v1080_v20 }
0x1161   :  { %1338 = vtanh.f32 %v558_v9 }
0x1163   :  { %v1622_v24 = vpop.f32.mrb[16].mxu0 }
0x1164   :  { %v1212_v25 = vpop.f32.mrb[17].mxu0 }
0x1165   :  { %v711_v26 = vpop.f32.mrb[18].mxu0 }
0x1166   :  { %v1213_v27 = vpop.f32.mrb[19].mxu0 }
0x116a   :  { %v1337_v29 = vpop.eup %1336 }
0x116b   :  { %v562_v30 = vadd.f32 1.0, %v1337_v29  ;;  %v1624_v31 = vpop.f32.mrb[20].mxu0  ;;  %v1339_v39 = vpop.eup %1338 }
0x116c   :  { %v1228_v32 = vpop.f32.mrb[21].mxu0 }
0x116d   :  { %1340 = vrcp.f32 %v562_v30  ;;  %v791_v33 = vpop.f32.mrb[22].mxu0 }
0x116e   :  { %v1229_v35 = vpop.f32.mrb[23].mxu0 }
0x1173   :  { %v1626_v36 = vpop.f32.mrb[24].mxu0 }
0x1174   :  { %v1244_v37 = vpop.f32.mrb[25].mxu0 }
0x1175   :  { %v871_v38 = vpop.f32.mrb[26].mxu0 }
0x1176   :  { %v1245_v40 = vpop.f32.mrb[27].mxu0 }
0x1177   :  { %v1341_v41 = vpop.eup %1340 }
0x1178   :  { %v566_v42 = vsel %vm1472_vm4, %v1339_v39, %v1341_v41 }
0x1179   :  { %568 = vrot.lane.b32.xlu0 %v566_v42, %s1401_s25  ;;  %v572_v45 = vmul.f32 %v566_v42, %v1574_v8 }
0x11eb   :  { %v569_v43 = vpop.permute.xlu0 %568 }
0x11ec   :  { %v571_v44 = vmul.f32 %v569_v43, %v566_v42 }
0x11ee   :  { %574 = vrot.lane.b32.xlu1 %v571_v44, %s1406_s6 }
0x1260   :  { %v575_v46 = vpop.permute.xlu1 %574 }
0x1261   :  { %v1633_v47 = vadd.f32 %v575_v46, %v572_v45 }
0x1263   :  { %1342 = vtanh.f32 %v1633_v47 }
0x126d   :  { %v1343_v48 = vpop.eup %1342 }
0x126e   :  { %580 = vrot.lane.b32.xlu0 %v1343_v48, %s1401_s25 }
0x12e0   :  { %v581_v49 = vpop.permute.xlu0 %580 }
0x12e1   :  { %v583_v51 = vmul.f32 %v581_v49, %v566_v42  ;;  %v1093_v42 = vld [vmem:[%s1703_s3 + $0x1] ss:$0 sm:$0xff] }
0x12e3   :  { %v584_v52 = vpack.c.bf16 %v583_v51, %v583_v51 }
0x12e5   :  { %586 = vrot.lane.b32.xlu1 %v584_v52, %s1406_s6 }
0x1357   :  { %v587_v53 = vpop.permute.xlu1 %586 }
0x1358   :  { %1203 = vmatmul.mubr.msk.bf16.vlgmr.msra.gmra.mrb[12].mxu1 %vm62_vm1, %v587_v53  ;;  %1259 = vmatmul.mubr.msk.bf16.vlgmr.msra.gmra.mrb[28].mxu0 %vm62_vm1, %v587_v53 }
0x1359   :  { %1215 = vmatpush3.bf16.msra.mxu1 %v1582_v14  ;;  %1218 = vmatprep.mubr.msk.bf16.mxu1 %vm1404_vm0, %v1403_v0 }
0x135a   :  { %1216 = vmatprep.subr.bf16.mxu1 %v1403_v0 }
0x135d   :  { %1217 = vmatpush3.bf16.msra.mxu1 %v1592_v17 }
0x135e   :  { %1230 = vmatprep.subr.bf16.mxu1 %v1403_v0 }
0x1360   :  { %1219 = vmatmul.mubr.msk.bf16.vlgmr.msra.gmra.mrb[16].mxu1 %vm62_vm1, %v1511_v50 }
0x1361   :  { %1231 = vmatpush3.bf16.msra.mxu1 %v1582_v14  ;;  %1234 = vmatprep.mubr.msk.bf16.mxu1 %vm1404_vm0, %v1403_v0 }
0x1362   :  { %1232 = vmatprep.subr.bf16.mxu1 %v1403_v0 }
0x1365   :  { %1233 = vmatpush3.bf16.msra.mxu1 %v1592_v17 }
0x1366   :  { %1246 = vmatprep.subr.bf16.mxu1 %v1403_v0 }
0x1368   :  { %1235 = vmatmul.mubr.msk.bf16.vlgmr.msra.gmra.mrb[20].mxu1 %vm62_vm1, %v1545_v34 }
0x1369   :  { %1247 = vmatpush3.bf16.msra.mxu1 %v1582_v14  ;;  %1250 = vmatprep.mubr.msk.bf16.mxu1 %vm1404_vm0, %v1403_v0 }
0x136a   :  { %1248 = vmatprep.subr.bf16.mxu1 %v1403_v0 }
0x136d   :  { %1249 = vmatpush3.bf16.msra.mxu1 %v1592_v17 }
0x136e   :  { %1262 = vmatprep.subr.bf16.mxu1 %v1403_v0 }
0x1370   :  { %1251 = vmatmul.mubr.msk.bf16.vlgmr.msra.gmra.mrb[24].mxu1 %vm62_vm1, %v1584_v15 }
0x1371   :  { %1263 = vmatpush3.bf16.msra.mxu1 %v1582_v14  ;;  %1266 = vmatprep.mubr.msk.bf16.mxu1 %vm1404_vm0, %v1403_v0 }
0x1372   :  { %1264 = vmatprep.subr.bf16.mxu1 %v1403_v0 }
0x1375   :  { %1265 = vmatpush3.bf16.msra.mxu1 %v1592_v17 }
0x142b   :  { %v625_v50 = vpop.f32.mrb[12].mxu1  ;;  %v948_v34 = vpop.f32.mrb[28].mxu0 }
0x142c   :  { %v631_v54 = vadd.f32 %v625_v50, %v1468_v7  ;;  %v1204_v55 = vpop.f32.mrb[13].mxu1  ;;  %v1260_v56 = vpop.f32.mrb[29].mxu0 }
0x142d   :  { %v628_v57 = vpop.f32.mrb[14].mxu1  ;;  %v951_v58 = vpop.f32.mrb[30].mxu0 }
0x142e   :  { %v1082_v59 = vmul.f32 -1.442695, %v631_v54  ;;  %v1205_v60 = vpop.f32.mrb[15].mxu1  ;;  %v1261_v61 = vpop.f32.mrb[31].mxu0 }
0x1430   :  { %1344 = vpow2.f32 %v1082_v59 }
0x1431   :  { %1346 = vtanh.f32 %v631_v54 }
0x1433   :  { %v748_v62 = vpop.f32.mrb[16].mxu1 }
0x1434   :  { %v1220_v63 = vpop.f32.mrb[17].mxu1 }
0x1435   :  { %v751_v1 = vpop.f32.mrb[18].mxu1 }
0x1436   :  { %v1221_v22 = vpop.f32.mrb[19].mxu1 }
0x143a   :  { %v1345_v2 = vpop.eup %1344 }
0x143b   :  { %v635_v0 = vadd.f32 1.0, %v1345_v2  ;;  %v828_v3 = vpop.f32.mrb[20].mxu1  ;;  %v1347_v10 = vpop.eup %1346 }
0x143c   :  { %v1236_v23 = vpop.f32.mrb[21].mxu1 }
0x143d   :  { %1348 = vrcp.f32 %v635_v0  ;;  %v831_v4 = vpop.f32.mrb[22].mxu1 }
0x143e   :  { %v1237_v7 = vpop.f32.mrb[23].mxu1 }
0x1443   :  { %v908_v5 = vpop.f32.mrb[24].mxu1 }
0x1444   :  { %v1252_v6 = vpop.f32.mrb[25].mxu1 }
0x1445   :  { %v911_v8 = vpop.f32.mrb[26].mxu1 }
0x1446   :  { %v1253_v11 = vpop.f32.mrb[27].mxu1 }
0x1447   :  { %v1349_v12 = vpop.eup %1348 }
0x1448   :  { %v639_v13 = vsel %vm1472_vm4, %v1347_v10, %v1349_v12 }
0x1449   :  { %641 = vrot.lane.b32.xlu0 %v639_v13, %s1401_s25  ;;  %v645_v17 = vmul.f32 %v639_v13, %v1633_v47 }
0x14bb   :  { %v642_v14 = vpop.permute.xlu0 %641 }
0x14bc   :  { %v644_v15 = vmul.f32 %v642_v14, %v639_v13 }
0x14be   :  { %647 = vrot.lane.b32.xlu1 %v644_v15, %s1406_s6 }
0x1530   :  { %v648_v28 = vpop.permute.xlu1 %647 }
0x1531   :  { %v650_v9 = vadd.f32 %v648_v28, %v645_v17 }
0x1533   :  { %1350 = vtanh.f32 %v650_v9 }
0x153d   :  { %v1351_v18 = vpop.eup %1350 }
0x153e   :  { %653 = vrot.lane.b32.xlu0 %v1351_v18, %s1401_s25 }
0x1542   :  { %1001 = vrot.lane.b32.xlu0 %v748_v62, %s1407_s2 }
0x1546   :  { %1009 = vrot.lane.b32.xlu0 %v828_v3, %s1408_s11 }
0x154a   :  { %1017 = vrot.lane.b32.xlu0 %v908_v5, %s1409_s12 }
0x15b0   :  { %v654_v16 = vpop.permute.xlu0 %653 }
0x15b1   :  { %v656_v19 = vmul.f32 %v654_v16, %v639_v13 }
0x15b3   :  { %v657_v20 = vpack.c.bf16 %v656_v19, %v656_v19 }
0x15b4   :  { %v1002_v30 = vpop.permute.xlu0 %1001 }
0x15b5   :  { %955 = vrot.lane.b32.xlu1 %v657_v20, %s1406_s6 }
0x15b8   :  { %v1010_v33 = vpop.permute.xlu0 %1009 }
0x15b9   :  { %1005 = vrot.lane.b32.xlu1 %v1624_v31, %s1406_s6  ;;  %v1029_v31 = vsel %vm1028_vm5, %v1622_v24, %v1002_v30 }
0x15bc   :  { %v1018_v38 = vpop.permute.xlu0 %1017 }
0x15bd   :  { %1013 = vrot.lane.b32.xlu1 %v1626_v36, %s1401_s25 }
0x15c1   :  { %1021 = vrot.lane.b32.xlu1 %v948_v34, %s1405_s0 }
0x1627   :  { %v956_v21 = vpop.permute.xlu1 %955 }
0x1628   :  { %1267 = vmatmul.mubr.msk.bf16.vlgmr.msra.gmra.mrb[28].mxu1 %vm62_vm1, %v956_v21 }
0x162b   :  { %v1006_v32 = vpop.permute.xlu1 %1005 }
0x162c   :  { %v1030_v36 = vsel %vm62_vm1, %v1029_v31, %v1006_v32 }
0x162d   :  { %v1032_v37 = vsel %vm1031_vm6, %v1030_v36, %v1010_v33 }
0x162f   :  { %v1014_v35 = vpop.permute.xlu1 %1013 }
0x1630   :  { %v1034_v39 = vsel %vm1033_vm7, %v1032_v37, %v1014_v35 }
0x1631   :  { %v1036_v41 = vsel %vm1035_vm8, %v1034_v39, %v1018_v38 }
0x1633   :  { %v1022_v40 = vpop.permute.xlu1 %1021 }
0x1634   :  { %v1038_v24 = vsel %vm1037_vm9, %v1036_v41, %v1022_v40 }
0x16fb   :  { %v994_v25 = vpop.f32.mrb[28].mxu1 }
0x16fc   :  { %1025 = vrot.lane.b32.xlu0 %v994_v25, %s1410_s13  ;;  %v1268_v26 = vpop.f32.mrb[29].mxu1 }
0x16fd   :  { %v997_v27 = vpop.f32.mrb[30].mxu1 }
0x16fe   :  { %v1269_v29 = vpop.f32.mrb[31].mxu1 }
0x176e   :  { %v1026_v43 = vpop.permute.xlu0 %1025 }
0x176f   :  { %v1040_v44 = vsel %vm1039_vm10, %v1038_v24, %v1026_v43 }
0x1770   :  { %v1045_v45 = vadd.f32 %v1093_v42, %v1040_v44 }
0x1772   :  { %1046 = vst [vmem:[#allocation5] sm:$0x3] %v1045_v45 }
0x1773   :  { %1385 = shalt.err (!%p1382_p12)
}
0x1774   :  { %s1386_s21 = scalar_lea.hbm %s1704_s4, 32 }
0x1775   :  { %p1387_p13 = scmp.ne.s32.totalorder %s1704_s4, %s1386_s21  ;;  %p1390_p0 = scmp.lt.u32.totalorder %s1386_s21, %s1704_s4 }
0x1777   :  { %p1392_p1 = pnand %p1390_p0, %p1387_p13 }
0x1779   :  { %1395 = shalt.err (!%p1392_p1)
}
0x177a   :  { %1056 = dma.vmem_to_hbm [thread:$0]  %s1054_s17, 32, %s1704_s4, [#allocation4]  }
0x177b   :  { %1398 = dma.done.wait [#allocation4], 32  }
0x177c   :  { %1399 = vsyncadd [#allocation4], 4294967264 }
0x177d   :  { %1060 = vsyncpa [#allocation3], 1 }
0x177e   :  { %1061 = vsyncpa [#allocation4], 1 }

</bundles_post_ra>
